<compile_context>
chip_gen: v5e
topology: v5e:2x2
jax: 0.10.0
libtpu: 0.0.40
codegen_flags: <defaults>
</compile_context>

<pallas_src>
import jax
import jax.numpy as jnp
from jax.experimental import pallas as pl
from jax.experimental.pallas import tpu as pltpu

N_FILTERS = 3
N_OUT_CH = 8
N_OUTPUTS = 28 * 9          # 252
DILATIONS = (1, 2, 4, 8)
H_DENSE = 56
H_PAD = 64                  # dense hidden padded 56 -> 64 (cheap MXU/layout insurance)


# ----------------------------------------------------------------------------
# Kernel: one batch tile (TB, 3L) -> (TB, 252), everything on the MXU
# ----------------------------------------------------------------------------
def _wavenet_kernel(x_ref, wc_ref, bc_ref, wo_ref, bo_ref,
                    wd0_ref, bd0_ref, wd1_ref, bd1_ref, out_ref):
    x = x_ref[...]                                                     # (TB, 3L)

    # four causal k=2 convs (all dilations at once) + ReLU                (TB, 12L)
    h1 = jnp.dot(x, wc_ref[...], preferred_element_type=jnp.float32) + bc_ref[...]
    h1 = jnp.maximum(h1, 0.0)

    # 1x1 conv (12 -> 8) + ReLU; the module's post-flatten ReLU is a no-op (TB, 8L)
    h2 = jnp.dot(h1, wo_ref[...], preferred_element_type=jnp.float32) + bo_ref[...]
    h2 = jnp.maximum(h2, 0.0)

    # dense 8L -> 56(pad 64) -> 252, no activation in between
    x0 = jnp.dot(h2, wd0_ref[...], preferred_element_type=jnp.float32) + bd0_ref[...]
    out = jnp.dot(x0, wd1_ref[...], preferred_element_type=jnp.float32) + bd1_ref[...]
    out_ref[...] = out.astype(out_ref.dtype)


# ----------------------------------------------------------------------------
# Wrapper
# ----------------------------------------------------------------------------
def _build_matrices(params, L, dtype=jnp.float32):
    """Pack all conv/dense weights into four (transposed) matmul operands."""
    eye_l = jnp.eye(L, dtype=dtype)

    def conv_block(w, d):
        # maps flattened input col (ci*L + s) -> conv channel row (co*L + t)
        # tap 0 multiplies x[t-d] (zero for t < d), tap 1 multiplies x[t]
        shift = jnp.eye(L, k=-d, dtype=dtype)            # shift[t, s] = 1 iff s = t-d
        return (jnp.kron(w[:, :, 0].astype(dtype), shift)
                + jnp.kron(w[:, :, 1].astype(dtype), eye_l))          # (3L, 3L)

    wc = jnp.concatenate(
        [conv_block(params["conv_w"], 1), conv_block(params["dil0_w"], 2),
         conv_block(params["dil1_w"], 4), conv_block(params["dil2_w"], 8)],
        axis=0)                                                        # (12L, 3L)
    bc = jnp.concatenate([jnp.repeat(params[k].astype(dtype), L)
                          for k in ("conv_b", "dil0_b", "dil1_b", "dil2_b")])  # (12L,)

    wo = jnp.kron(params["out_w"][:, :, 0].astype(dtype), eye_l)      # (8L, 12L)
    bo = jnp.repeat(params["out_b"].astype(dtype), L)                 # (8L,)

    wd0 = jnp.zeros((N_OUT_CH * L, H_PAD), dtype).at[:, :H_DENSE].set(
        params["dense0_w"].astype(dtype).T)                           # (8L, 64)
    bd0 = jnp.zeros((H_PAD,), dtype).at[:H_DENSE].set(params["dense0_b"].astype(dtype))
    wd1 = jnp.zeros((H_PAD, N_OUTPUTS), dtype).at[:H_DENSE, :].set(
        params["dense1_w"].astype(dtype).T)                           # (64, 252)
    bd1 = params["dense1_b"].astype(dtype)                            # (252,)

    return (wc.T, bc[None, :], wo.T, bo[None, :],
            wd0, bd0[None, :], wd1, bd1[None, :])


def _batch_tile(B):
    # Large tile to amortize the ~0.35 us per-grid-step overhead, but keep the
    # grid length >= 2 whenever B allows it so both v7x TensorCores get work.
    # Must be a multiple of 8 (batch lives in the sublane dim).
    if B >= 1024:
        return 512
    return max(8, ((B + 15) // 16) * 8)       # ~ceil(B/2), rounded up to 8


def stocastic_kaggler_wavenet_forward(x, params):
    """x: (B, n_dyn_fea, use_days) f32  ->  (B, 9, 28) f32."""
    B, C, L = x.shape
    if C != N_FILTERS:
        raise ValueError("the module's forward requires n_dyn_fea == n_filters == 3")
    assert params["dense0_w"].shape == (H_DENSE, N_OUT_CH * L)
    assert params["dense1_w"].shape == (N_OUTPUTS, H_DENSE)

    wc_t, bc, wo_t, bo, wd0, bd0, wd1, bd1 = _build_matrices(params, L)

    TB = _batch_tile(B)
    B_pad = pl.cdiv(B, TB) * TB
    grid = (B_pad // TB,)

    # Batch-major flattened input: column index = c*L + t (row-major reshape, free).
    x_bm = x.reshape(B, C * L).astype(jnp.float32)
    if B_pad != B:
        # Zero-pad the batch: padded rows only produce well-defined values in
        # output rows that are sliced off below; they never feed a reduction.
        x_bm = jnp.pad(x_bm, ((0, B_pad - B), (0, 0)))

    CL = C * L                     # 48
    M1 = 4 * N_FILTERS * L         # 12L = 192
    M2 = N_OUT_CH * L              # 8L  = 128
    const = lambda i: (0, 0)       # resident operands (DMA'd once, kept in VMEM)

    out = pl.pallas_call(
        _wavenet_kernel,
        out_shape=jax.ShapeDtypeStruct((B_pad, N_OUTPUTS), jnp.float32),
        grid=grid,
        in_specs=[
            pl.BlockSpec((TB, CL), lambda i: (i, 0)),        # input batch tile
            pl.BlockSpec((CL, M1), const),                   # causal-conv matrix
            pl.BlockSpec((1, M1), const),
            pl.BlockSpec((M1, M2), const),                   # 1x1 conv matrix
            pl.BlockSpec((1, M2), const),
            pl.BlockSpec((M2, H_PAD), const),                # dense0
            pl.BlockSpec((1, H_PAD), const),
            pl.BlockSpec((H_PAD, N_OUTPUTS), const),         # dense1
            pl.BlockSpec((1, N_OUTPUTS), const),
        ],
        out_specs=pl.BlockSpec((TB, N_OUTPUTS), lambda i: (i, 0)),
        compiler_params=pltpu.CompilerParams(
            dimension_semantics=("parallel",)),
    )(x_bm, wc_t, bc, wo_t, bo, wd0, bd0, wd1, bd1)

    if B_pad != B:
        out = out[:B]
    return out.reshape(B, 9, 28)


# ----------------------------------------------------------------------------
# Pure-JAX reference (mirrors the PyTorch forward exactly)
# ----------------------------------------------------------------------------
def reference_forward(x, params):
    def cconv(inp, w, b, d):
        k = w.shape[-1]
        Lt = inp.shape[-1]
        xp = jnp.pad(inp, ((0, 0), (0, 0), (d * (k - 1), 0)))
        y = b[None, :, None]
        for tap in range(k):
            y = y + jnp.einsum("oi,bil->bol", w[:, :, tap],
                               xp[..., tap * d:tap * d + Lt], precision="highest")
        return y

    relu = jax.nn.relu
    h0 = relu(cconv(x, params["conv_w"], params["conv_b"], 1))
    h1 = relu(cconv(x, params["dil0_w"], params["dil0_b"], 2))
    h2 = relu(cconv(x, params["dil1_w"], params["dil1_b"], 4))
    h3 = relu(cconv(x, params["dil2_w"], params["dil2_b"], 8))
    c = jnp.concatenate([h0, h1, h2, h3], axis=1)                       # (B, 12, L)
    conv_out = relu(jnp.einsum("oi,bil->bol", params["out_w"][:, :, 0], c,
                               precision="highest")
                    + params["out_b"][None, :, None])                   # (B, 8, L)
    flat = relu(conv_out.reshape(conv_out.shape[0], -1))                # channel-major
    x0 = jnp.dot(flat, params["dense0_w"].T, precision="highest") + params["dense0_b"]
    out = jnp.dot(x0, params["dense1_w"].T, precision="highest") + params["dense1_b"]
    return out.reshape(-1, 9, 28)


# ----------------------------------------------------------------------------
# Deterministic parameter init + demo
# ----------------------------------------------------------------------------
def init_params(key, n_dyn_fea, use_days):
    ks = jax.random.split(key, 14)

    def rnd(k, shape, scale=0.1):
        return scale * jax.random.normal(k, shape, dtype=jnp.float32)

    return {
        "conv_w": rnd(ks[0], (N_FILTERS, n_dyn_fea, 2)),
        "conv_b": rnd(ks[1], (N_FILTERS,)),
        "dil0_w": rnd(ks[2], (N_FILTERS, N_FILTERS, 2)),
        "dil0_b": rnd(ks[3], (N_FILTERS,)),
        "dil1_w": rnd(ks[4], (N_FILTERS, N_FILTERS, 2)),
        "dil1_b": rnd(ks[5], (N_FILTERS,)),
        "dil2_w": rnd(ks[6], (N_FILTERS, N_FILTERS, 2)),
        "dil2_b": rnd(ks[7], (N_FILTERS,)),
        "out_w": rnd(ks[8], (N_OUT_CH, 4 * N_FILTERS, 1)),
        "out_b": rnd(ks[9], (N_OUT_CH,)),
        "dense0_w": rnd(ks[10], (H_DENSE, N_OUT_CH * use_days)),
        "dense0_b": rnd(ks[11], (H_DENSE,)),
        "dense1_w": rnd(ks[12], (N_OUTPUTS, H_DENSE)),
        "dense1_b": rnd(ks[13], (N_OUTPUTS,)),
    }


if __name__ == "__main__":
    # args.use_days = 16 (seq length), n_dyn_fea = 3 (required by the module), batch = 2
    B, n_dyn_fea, use_days = 2, 3, 16

    key = jax.random.PRNGKey(0)
    k_param, k_x = jax.random.split(key)
    params = init_params(k_param, n_dyn_fea, use_days)
    x = jax.random.normal(k_x, (B, n_dyn_fea, use_days), dtype=jnp.float32)

    y = jax.block_until_ready(stocastic_kaggler_wavenet_forward(x, params))
    y_ref = jax.block_until_ready(reference_forward(x, params))

    assert y.shape == (B, 9, 28), y.shape
    # Structural bugs (wrong shift / flatten / packing) give O(1e-1) errors;
    # MXU pass-precision differences across the 4 chained f32 dots stay well
    # below this tolerance.
    err = float(jnp.max(jnp.abs(y - y_ref)))
    assert err < 5e-3, err
    print("KERNEL_OK")
</pallas_src>

<mosaic_0001>
module attributes {stable_mosaic.version = 11 : i64} {
  func.func @_wavenet_kernel(%arg0: i32, %arg1: memref<8x48xf32, #tpu.memory_space<vmem>>, %arg2: memref<48x192xf32, #tpu.memory_space<vmem>>, %arg3: memref<1x192xf32, #tpu.memory_space<vmem>>, %arg4: memref<192x128xf32, #tpu.memory_space<vmem>>, %arg5: memref<1x128xf32, #tpu.memory_space<vmem>>, %arg6: memref<128x64xf32, #tpu.memory_space<vmem>>, %arg7: memref<1x64xf32, #tpu.memory_space<vmem>>, %arg8: memref<64x252xf32, #tpu.memory_space<vmem>>, %arg9: memref<1x252xf32, #tpu.memory_space<vmem>>, %arg10: memref<8x252xf32, #tpu.memory_space<vmem>>) attributes {dimension_semantics = [#tpu.dimension_semantics<parallel>], iteration_bounds = array<i64: 1>, scalar_prefetch = 0 : i64, scratch_operands = 0 : i64, tpu.core_type = #tpu.core_type<tc>, window_params = [{transform_indices = @transform_0, window_bounds = array<i64: 8, 48>}, {pipeline_mode = #tpu.pipeline_mode<synchronous>, transform_indices = @transform_1, window_bounds = array<i64: 48, 192>}, {pipeline_mode = #tpu.pipeline_mode<synchronous>, transform_indices = @transform_2, window_bounds = array<i64: 1, 192>}, {pipeline_mode = #tpu.pipeline_mode<synchronous>, transform_indices = @transform_3, window_bounds = array<i64: 192, 128>}, {pipeline_mode = #tpu.pipeline_mode<synchronous>, transform_indices = @transform_4, window_bounds = array<i64: 1, 128>}, {pipeline_mode = #tpu.pipeline_mode<synchronous>, transform_indices = @transform_5, window_bounds = array<i64: 128, 64>}, {pipeline_mode = #tpu.pipeline_mode<synchronous>, transform_indices = @transform_6, window_bounds = array<i64: 1, 64>}, {pipeline_mode = #tpu.pipeline_mode<synchronous>, transform_indices = @transform_7, window_bounds = array<i64: 64, 252>}, {pipeline_mode = #tpu.pipeline_mode<synchronous>, transform_indices = @transform_8, window_bounds = array<i64: 1, 252>}, {transform_indices = @transform_9, window_bounds = array<i64: 8, 252>}]} {
    %c0 = arith.constant 0 : index
    %c0_0 = arith.constant 0 : index
    %0 = vector.load %arg1[%c0, %c0_0] : memref<8x48xf32, #tpu.memory_space<vmem>>, vector<8x48xf32>
    %c0_1 = arith.constant 0 : index
    %c0_2 = arith.constant 0 : index
    %1 = vector.load %arg2[%c0_1, %c0_2] : memref<48x192xf32, #tpu.memory_space<vmem>>, vector<48x192xf32>
    %cst = arith.constant dense<0.000000e+00> : vector<8x192xf32>
    %2 = tpu.matmul %0, %1, %cst {dimension_numbers = #tpu.dot_dimension_numbers<[1], [0], [0], [1], [0, 0, 1, 1], [], []>} : vector<8x48xf32>, vector<48x192xf32>, vector<8x192xf32> -> vector<8x192xf32>
    %c0_3 = arith.constant 0 : index
    %c0_4 = arith.constant 0 : index
    %3 = vector.load %arg3[%c0_3, %c0_4] : memref<1x192xf32, #tpu.memory_space<vmem>>, vector<1x192xf32>
    %4 = vector.broadcast %3 : vector<1x192xf32> to vector<8x192xf32>
    %5 = arith.addf %2, %4 : vector<8x192xf32>
    %cst_5 = arith.constant 0.000000e+00 : f32
    %6 = vector.broadcast %cst_5 : f32 to vector<8x192xf32>
    %7 = arith.maximumf %5, %6 : vector<8x192xf32>
    %c0_6 = arith.constant 0 : index
    %c0_7 = arith.constant 0 : index
    %8 = vector.load %arg4[%c0_6, %c0_7] : memref<192x128xf32, #tpu.memory_space<vmem>>, vector<192x128xf32>
    %cst_8 = arith.constant dense<0.000000e+00> : vector<8x128xf32>
    %9 = tpu.matmul %7, %8, %cst_8 {dimension_numbers = #tpu.dot_dimension_numbers<[1], [0], [0], [1], [0, 0, 1, 1], [], []>} : vector<8x192xf32>, vector<192x128xf32>, vector<8x128xf32> -> vector<8x128xf32>
    %c0_9 = arith.constant 0 : index
    %c0_10 = arith.constant 0 : index
    %10 = vector.load %arg5[%c0_9, %c0_10] : memref<1x128xf32, #tpu.memory_space<vmem>>, vector<1x128xf32>
    %11 = vector.broadcast %10 : vector<1x128xf32> to vector<8x128xf32>
    %12 = arith.addf %9, %11 : vector<8x128xf32>
    %cst_11 = arith.constant 0.000000e+00 : f32
    %13 = vector.broadcast %cst_11 : f32 to vector<8x128xf32>
    %14 = arith.maximumf %12, %13 : vector<8x128xf32>
    %c0_12 = arith.constant 0 : index
    %c0_13 = arith.constant 0 : index
    %15 = vector.load %arg6[%c0_12, %c0_13] : memref<128x64xf32, #tpu.memory_space<vmem>>, vector<128x64xf32>
    %cst_14 = arith.constant dense<0.000000e+00> : vector<8x64xf32>
    %16 = tpu.matmul %14, %15, %cst_14 {dimension_numbers = #tpu.dot_dimension_numbers<[1], [0], [0], [1], [0, 0, 1, 1], [], []>} : vector<8x128xf32>, vector<128x64xf32>, vector<8x64xf32> -> vector<8x64xf32>
    %c0_15 = arith.constant 0 : index
    %c0_16 = arith.constant 0 : index
    %17 = vector.load %arg7[%c0_15, %c0_16] : memref<1x64xf32, #tpu.memory_space<vmem>>, vector<1x64xf32>
    %18 = vector.broadcast %17 : vector<1x64xf32> to vector<8x64xf32>
    %19 = arith.addf %16, %18 : vector<8x64xf32>
    %c0_17 = arith.constant 0 : index
    %c0_18 = arith.constant 0 : index
    %20 = vector.load %arg8[%c0_17, %c0_18] : memref<64x252xf32, #tpu.memory_space<vmem>>, vector<64x252xf32>
    %cst_19 = arith.constant dense<0.000000e+00> : vector<8x252xf32>
    %21 = tpu.matmul %19, %20, %cst_19 {dimension_numbers = #tpu.dot_dimension_numbers<[1], [0], [0], [1], [0, 0, 1, 1], [], []>} : vector<8x64xf32>, vector<64x252xf32>, vector<8x252xf32> -> vector<8x252xf32>
    %c0_20 = arith.constant 0 : index
    %c0_21 = arith.constant 0 : index
    %22 = vector.load %arg9[%c0_20, %c0_21] : memref<1x252xf32, #tpu.memory_space<vmem>>, vector<1x252xf32>
    %23 = vector.broadcast %22 : vector<1x252xf32> to vector<8x252xf32>
    %24 = arith.addf %21, %23 : vector<8x252xf32>
    %c0_22 = arith.constant 0 : index
    %c0_23 = arith.constant 0 : index
    %25 = vector.load %arg10[%c0_22, %c0_23] : memref<8x252xf32, #tpu.memory_space<vmem>>, vector<8x252xf32>
    tpu.vector_store %arg10[%c0_22, %c0_23], %24 {strides = array<i32>} : memref<8x252xf32, #tpu.memory_space<vmem>>, vector<8x252xf32>,
    return
  }
  func.func @transform_0(%arg0: i32) -> (i32, i32) {
    %c0_i32 = arith.constant 0 : i32
    %c0_i32_0 = arith.constant 0 : i32
    return %arg0, %c0_i32 : i32, i32
  }
  func.func @transform_1(%arg0: i32) -> (i32, i32) {
    %c0_i32 = arith.constant 0 : i32
    %c0_i32_0 = arith.constant 0 : i32
    %c0_i32_1 = arith.constant 0 : i32
    return %c0_i32, %c0_i32_0 : i32, i32
  }
  func.func @transform_2(%arg0: i32) -> (i32, i32) {
    %c0_i32 = arith.constant 0 : i32
    %c0_i32_0 = arith.constant 0 : i32
    %c0_i32_1 = arith.constant 0 : i32
    return %c0_i32, %c0_i32_0 : i32, i32
  }
  func.func @transform_3(%arg0: i32) -> (i32, i32) {
    %c0_i32 = arith.constant 0 : i32
    %c0_i32_0 = arith.constant 0 : i32
    %c0_i32_1 = arith.constant 0 : i32
    return %c0_i32, %c0_i32_0 : i32, i32
  }
  func.func @transform_4(%arg0: i32) -> (i32, i32) {
    %c0_i32 = arith.constant 0 : i32
    %c0_i32_0 = arith.constant 0 : i32
    %c0_i32_1 = arith.constant 0 : i32
    return %c0_i32, %c0_i32_0 : i32, i32
  }
  func.func @transform_5(%arg0: i32) -> (i32, i32) {
    %c0_i32 = arith.constant 0 : i32
    %c0_i32_0 = arith.constant 0 : i32
    %c0_i32_1 = arith.constant 0 : i32
    return %c0_i32, %c0_i32_0 : i32, i32
  }
  func.func @transform_6(%arg0: i32) -> (i32, i32) {
    %c0_i32 = arith.constant 0 : i32
    %c0_i32_0 = arith.constant 0 : i32
    %c0_i32_1 = arith.constant 0 : i32
    return %c0_i32, %c0_i32_0 : i32, i32
  }
  func.func @transform_7(%arg0: i32) -> (i32, i32) {
    %c0_i32 = arith.constant 0 : i32
    %c0_i32_0 = arith.constant 0 : i32
    %c0_i32_1 = arith.constant 0 : i32
    return %c0_i32, %c0_i32_0 : i32, i32
  }
  func.func @transform_8(%arg0: i32) -> (i32, i32) {
    %c0_i32 = arith.constant 0 : i32
    %c0_i32_0 = arith.constant 0 : i32
    %c0_i32_1 = arith.constant 0 : i32
    return %c0_i32, %c0_i32_0 : i32, i32
  }
  func.func @transform_9(%arg0: i32) -> (i32, i32) {
    %c0_i32 = arith.constant 0 : i32
    %c0_i32_0 = arith.constant 0 : i32
    return %arg0, %c0_i32 : i32, i32
  }
}

</mosaic_0001>

<bundles_post_ra>
// kernel: tpu_custom_call.1
= control target key start
LH: loop header
LB: loop body
LE: loop exit
PB: predicated region body
PF: predicated region fallthrough
CT: control target
= control target key end

     0   :  { %14 = vsyncpa [#allocation3], 0  ;;  %s705_s0 = inlined_call_operand.hbm [shape: f32[8,48], index: 0, kind: input, shape index: {}]   ;;  %s706_s1 = inlined_call_operand.hbm [shape: f32[48,192], index: 1, kind: input, shape index: {}]   ;;  %s707_s2 = inlined_call_operand.vmem [shape: f32[1,192], index: 2, kind: input, shape index: {}]   ;;  %s708_s3 = inlined_call_operand.vmem [shape: f32[192,128], index: 3, kind: input, shape index: {}]   ;;  %s709_s4 = inlined_call_operand.hbm [shape: f32[1,128], index: 4, kind: input, shape index: {}]   ;;  %s710_s5 = inlined_call_operand.vmem [shape: f32[128,64], index: 5, kind: input, shape index: {}]   ;;  %s711_s6 = inlined_call_operand.vmem [shape: f32[1,64], index: 6, kind: input, shape index: {}]   ;;  %s712_s7 = inlined_call_operand.hbm [shape: f32[64,252], index: 7, kind: input, shape index: {}]   ;;  %s713_s8 = inlined_call_operand.vmem [shape: f32[1,252], index: 8, kind: input, shape index: {}]   ;;  %s714_s9 = inlined_call_operand.hbm [shape: f32[8,252], index: 9, kind: output, shape index: {}]  }
   0x1   :  { %15 = vsyncpa [#allocation6], 0 }
   0x2   :  { %16 = vsyncpa [#allocation9], 0  ;;  %s33_s11 = sshll.u32 %s706_s1, 4  ;;  %s34_s11 = int_to_ptr.hbm [resolvable:$true] %s33_s11 }
   0x3   :  { %17 = vsyncpa [#allocation4], 0  ;;  %s499_s12 = smov [#allocation5]   ;;  %s23_s16 = sshll.u32 %s705_s0, 4  ;;  %s24_s16 = int_to_ptr.hbm [resolvable:$true] %s23_s16 }
   0x4   :  { %s35_s13 = sshll.u32 %s499_s12, 4  ;;  %s500_s17 = smov 256   ;;  %s36_s13 = int_to_ptr.vmem [resolvable:$true] %s35_s13 }
   0x5   :  { %s501_s18 = smov 16   ;;  %s502_s19 = smov [#allocation2]  }
   0x6   :  { %41 = dma.hbm_to_vmem [thread:$0]  %s34_s11, 1536, %s36_s13, [#allocation6], %s500_s17, %s500_s17, %s501_s18  }
   0x7   :  { %s25_s20 = sshll.u32 %s502_s19, 4  ;;  %s51_s23 = sshll.u32 %s709_s4, 4  ;;  %s26_s20 = int_to_ptr.vmem [resolvable:$true] %s25_s20  ;;  %s52_s23 = int_to_ptr.hbm [resolvable:$true] %s51_s23 }
   0x8   :  { %28 = dma.hbm_to_vmem [thread:$0]  %s24_s16, 128, %s26_s20, [#allocation3]  }
   0x9   :  { %s65_s25 = sshll.u32 %s712_s7, 4  ;;  %s503_s26 = smov [#allocation7]   ;;  %s66_s25 = int_to_ptr.hbm [resolvable:$true] %s65_s25 }
   0xa   :  { %s53_s27 = sshll.u32 %s503_s26, 4  ;;  %s504_s0 = smov [#allocation8]   ;;  %s54_s27 = int_to_ptr.vmem [resolvable:$true] %s53_s27 }
   0xb   :  { %56 = dma.hbm_to_vmem [thread:$0]  %s52_s23, 16, %s54_s27, [#allocation6]  }
   0xc   :  { %s67_s28 = sshll.u32 %s504_s0, 4  ;;  %s68_s28 = int_to_ptr.vmem [resolvable:$true] %s67_s28 }
   0xd   :  { %73 = dma.hbm_to_vmem [thread:$0]  %s66_s25, 2048, %s68_s28, [#allocation9], %s500_s17, %s500_s17, %s501_s18  }
   0xe   :  { %491 = dma.done.wait [#allocation3], 128  }
   0xf   :  { %492 = vsyncadd [#allocation3], 4294967168 }
  0x10   :  { %493 = dma.done.wait [#allocation6], 1552  }
  0x11   :  { %494 = vsyncadd [#allocation6], 4294965744 }
  0x12   :  { %495 = dma.done.wait [#allocation9], 2048  }
  0x13   :  { %496 = vsyncadd [#allocation9], 4294965248  ;;  %v103_v0 = vld [vmem:[#allocation5 + $0x50] sm:$0xff]  ;;  %v101_v1 = vld [vmem:[#allocation5 + $0x40] sm:$0xff]  ;;  %vm111_vm0 = vcmask 392192   ;;  %vm185_vm1 = vcmask 523264  }
  0x14   :  { %125 = vmatpush.msra.mxu1 %v103_v0  ;;  %v99_v2 = vld [vmem:[#allocation5 + $0x30] sm:$0xff]  ;;  %v97_v3 = vld [vmem:[#allocation5 + $0x20] sm:$0xff]  ;;  %v171_v5 = vld [vmem:[%s708_s3 + $0x70] sm:$0xff]  ;;  %s505_s13 = smov [#allocation10]   ;;  %vm336_vm2 = vcmask 1014784  }
  0x15   :  { %v172_v4 = vld [vmem:[%s708_s3 + $0x78] sm:$0xff]  ;;  %v170_v7 = vld [vmem:[%s708_s3 + $0x68] sm:$0xff]  ;;  %v169_v9 = vld [vmem:[%s708_s3 + $0x60] sm:$0xff]  ;;  %s343_s14 = sshll.u32 %s505_s13, 4  ;;  %s344_s14 = int_to_ptr.vmem [resolvable:$true] %s343_s14 }
  0x16   :  { %126 = vmatpush.msra.mxu1 %v101_v1  ;;  %189 = vmatpush.msra.mxu2 %v172_v4  ;;  %v95_v6 = vld [vmem:[#allocation5 + $0x10] sm:$0xff]  ;;  %v93_v8 = vld [vmem:[#allocation5] sm:$0xff]  ;;  %v104_v11 = vld [vmem:[#allocation5 + $0x58] sm:$0xff] }
  0x17   :  { %v180_v10 = vld [vmem:[%s708_s3 + $0xb8] sm:$0xff]  ;;  %v92_v12 = vld [vmem:[#allocation2] sm:$0xff]  ;;  %v102_v14 = vld [vmem:[#allocation5 + $0x48] sm:$0xff] }
  0x18   :  { %127 = vmatpush.msra.mxu1 %v99_v2  ;;  %190 = vmatpush.msra.mxu2 %v171_v5  ;;  %v168_v13 = vld [vmem:[%s708_s3 + $0x58] sm:$0xff]  ;;  %v167_v15 = vld [vmem:[%s708_s3 + $0x50] sm:$0xff]  ;;  %v100_v16 = vld [vmem:[#allocation5 + $0x38] sm:$0xff] }
  0x19   :  { %217 = vmatpush.msra.mxu3 %v180_v10  ;;  %v166_v17 = vld [vmem:[%s708_s3 + $0x48] sm:$0xff]  ;;  %v98_v18 = vld [vmem:[#allocation5 + $0x28] sm:$0xff]  ;;  %v165_v19 = vld [vmem:[%s708_s3 + $0x40] sm:$0xff] }
  0x1a   :  { %128 = vmatpush.msra.mxu1 %v97_v3  ;;  %191 = vmatpush.msra.mxu2 %v170_v7  ;;  %v96_v20 = vld [vmem:[#allocation5 + $0x18] sm:$0xff]  ;;  %v164_v21 = vld [vmem:[%s708_s3 + $0x38] sm:$0xff]  ;;  %v94_v22 = vld [vmem:[#allocation5 + $0x8] sm:$0xff] }
  0x1b   :  { %v163_v23 = vld [vmem:[%s708_s3 + $0x30] sm:$0xff]  ;;  %v162_v24 = vld [vmem:[%s708_s3 + $0x28] sm:$0xff]  ;;  %v161_v25 = vld [vmem:[%s708_s3 + $0x20] sm:$0xff] }
  0x1c   :  { %129 = vmatpush.msra.mxu1 %v95_v6  ;;  %192 = vmatpush.msra.mxu2 %v169_v9  ;;  %v160_v26 = vld [vmem:[%s708_s3 + $0x18] sm:$0xff]  ;;  %v159_v27 = vld [vmem:[%s708_s3 + $0x10] sm:$0xff]  ;;  %v158_v29 = vld [vmem:[%s708_s3 + $0x8] sm:$0xff] }
  0x1d   :  { %v179_v28 = vld [vmem:[%s708_s3 + $0xb0] sm:$0xff]  ;;  %v178_v30 = vld [vmem:[%s708_s3 + $0xa8] sm:$0xff]  ;;  %v157_v31 = vld [vmem:[%s708_s3] sm:$0xff] }
  0x1e   :  { %130 = vmatpush.msra.mxu1 %v93_v8  ;;  %193 = vmatpush.msra.mxu2 %v168_v13  ;;  %v177_v32 = vld [vmem:[%s708_s3 + $0xa0] sm:$0xff]  ;;  %v176_v33 = vld [vmem:[%s708_s3 + $0x98] sm:$0xff]  ;;  %v175_v34 = vld [vmem:[%s708_s3 + $0x90] sm:$0xff] }
  0x1f   :  { %357 = vmatmul.msk.f32.vlgmr.msra.gmra.mxu1 %vm111_vm0, %v92_v12  ;;  %218 = vmatpush.msra.mxu3 %v179_v28  ;;  %v174_v35 = vld [vmem:[%s708_s3 + $0x88] sm:$0xff]  ;;  %v173_v36 = vld [vmem:[%s708_s3 + $0x80] sm:$0xff]  ;;  %v245_v37 = vld [vmem:[%s710_s5 + $0x78] sm:$0xff] }
  0x20   :  { %145 = vmatpush.msrb.mxu1 %v104_v11  ;;  %194 = vmatpush.msra.mxu2 %v167_v15  ;;  %v244_v38 = vld [vmem:[%s710_s5 + $0x70] sm:$0xff]  ;;  %v243_v39 = vld [vmem:[%s710_s5 + $0x68] sm:$0xff]  ;;  %v242_v40 = vld [vmem:[%s710_s5 + $0x60] sm:$0xff] }
  0x21   :  { %219 = vmatpush.msra.mxu3 %v178_v30  ;;  %250 = vmatpush.msra.mxu0 %v245_v37  ;;  %v241_v41 = vld [vmem:[%s710_s5 + $0x58] sm:$0xff]  ;;  %v240_v42 = vld [vmem:[%s710_s5 + $0x50] sm:$0xff]  ;;  %v239_v43 = vld [vmem:[%s710_s5 + $0x48] sm:$0xff] }
  0x22   :  { %146 = vmatpush.msrb.mxu1 %v102_v14  ;;  %195 = vmatpush.msra.mxu2 %v166_v17  ;;  %v105_v44 = vld [vmem:[%s707_s2] sm:$0x3]  ;;  %v237_v47 = vld [vmem:[%s710_s5 + $0x38] sm:$0xff]  ;;  %v236_v55 = vld [vmem:[%s710_s5 + $0x30] sm:$0xff] }
  0x23   :  { %220 = vmatpush.msra.mxu3 %v177_v32  ;;  %251 = vmatpush.msra.mxu0 %v244_v38  ;;  %v238_v45 = vld [vmem:[%s710_s5 + $0x40] sm:$0xff]  ;;  %v107_v46 = vperm.slane %v105_v44, 0  ;;  %v108_v51 = vperm.slane %v105_v44, 1  ;;  %v235_v56 = vld [vmem:[%s710_s5 + $0x28] sm:$0xff]  ;;  %v233_v58 = vld [vmem:[%s710_s5 + $0x18] sm:$0xff] }
  0x24   :  { %147 = vmatpush.msrb.mxu1 %v100_v16  ;;  %196 = vmatpush.msra.mxu2 %v165_v19  ;;  %v234_v57 = vld [vmem:[%s710_s5 + $0x20] sm:$0xff]  ;;  %v232_v59 = vld [vmem:[%s710_s5 + $0x10] sm:$0xff]  ;;  %v231_v60 = vld [vmem:[%s710_s5 + $0x8] sm:$0xff] }
  0x25   :  { %221 = vmatpush.msra.mxu3 %v176_v33  ;;  %252 = vmatpush.msra.mxu0 %v243_v39  ;;  %v230_v61 = vld [vmem:[%s710_s5] sm:$0xff]  ;;  %v282_v0 = vld [vmem:[#allocation8 + $0x60] sm:$0xff]  ;;  %v283_v1 = vld [vmem:[#allocation8 + $0x68] sm:$0xff] }
  0x26   :  { %148 = vmatpush.msrb.mxu1 %v98_v18  ;;  %197 = vmatpush.msra.mxu2 %v164_v21  ;;  %v284_v62 = vld [vmem:[#allocation8 + $0x70] sm:$0xff]  ;;  %v285_v63 = vld [vmem:[#allocation8 + $0x78] sm:$0xff]  ;;  %v278_v4 = vld [vmem:[#allocation8 + $0x40] sm:$0xff] }
  0x27   :  { %222 = vmatpush.msra.mxu3 %v175_v34  ;;  %253 = vmatpush.msra.mxu0 %v242_v40  ;;  %v280_v2 = vld [vmem:[#allocation8 + $0x50] sm:$0xff]  ;;  %v281_v3 = vld [vmem:[#allocation8 + $0x58] sm:$0xff]  ;;  %v279_v5 = vld [vmem:[#allocation8 + $0x48] sm:$0xff] }
  0x28   :  { %149 = vmatpush.msrb.mxu1 %v96_v20  ;;  %198 = vmatpush.msra.mxu2 %v163_v23  ;;  %v276_v6 = vld [vmem:[#allocation8 + $0x30] sm:$0xff]  ;;  %v277_v7 = vld [vmem:[#allocation8 + $0x38] sm:$0xff]  ;;  %v274_v8 = vld [vmem:[#allocation8 + $0x20] sm:$0xff] }
  0x29   :  { %223 = vmatpush.msra.mxu3 %v174_v35  ;;  %254 = vmatpush.msra.mxu0 %v241_v41  ;;  %v275_v9 = vld [vmem:[#allocation8 + $0x28] sm:$0xff]  ;;  %v369_v10 = vld [vmem:[#allocation7] ss:$0 sm:$0xff]  ;;  %v272_v16 = vld [vmem:[#allocation8 + $0x10] sm:$0xff] }
  0x2a   :  { %150 = vmatpush.msrb.mxu1 %v94_v22  ;;  %199 = vmatpush.msra.mxu2 %v162_v24  ;;  %v273_v17 = vld [vmem:[#allocation8 + $0x18] sm:$0xff]  ;;  %v270_v18 = vld [vmem:[#allocation8] sm:$0xff]  ;;  %v271_v19 = vld [vmem:[#allocation8 + $0x8] sm:$0xff] }
  0x2b   :  { %358 = vmatmul.msk.f32.vlgmr.msrb.gmra.mxu1 %vm111_vm0, %v92_v12  ;;  %224 = vmatpush.msra.mxu3 %v173_v36  ;;  %v370_v20 = vld [vmem:[%s711_s6] ss:$0 sm:$0xff]  ;;  %s345_s6 = sshll.u32 %s714_s9, 4  ;;  %s346_s6 = int_to_ptr.hbm [resolvable:$true] %s345_s6 }
  0x2c   :  { %200 = vmatpush.msra.mxu2 %v161_v25  ;;  %255 = vmatpush.msra.mxu0 %v240_v42  ;;  %v286_v23 = vld [vmem:[%s713_s8] sm:$0x3] }
  0x2d   :  { %303 = vmatpush.msra.mxu1 %v284_v62  ;;  %323 = vmatpush.msrb.mxu3 %v285_v63  ;;  %v288_v24 = vperm.slane %v286_v23, 0 }
  0x2e   :  { %201 = vmatpush.msra.mxu2 %v160_v26  ;;  %256 = vmatpush.msra.mxu0 %v239_v43 }
  0x2f   :  { %304 = vmatpush.msra.mxu1 %v282_v0  ;;  %324 = vmatpush.msrb.mxu3 %v283_v1 }
  0x30   :  { %202 = vmatpush.msra.mxu2 %v159_v27  ;;  %257 = vmatpush.msra.mxu0 %v238_v45  ;;  %v289_v27 = vperm.slane %v286_v23, 1 }
  0x31   :  { %305 = vmatpush.msra.mxu1 %v280_v2  ;;  %325 = vmatpush.msrb.mxu3 %v281_v3 }
  0x32   :  { %203 = vmatpush.msra.mxu2 %v158_v29  ;;  %258 = vmatpush.msra.mxu0 %v237_v47 }
  0x33   :  { %306 = vmatpush.msra.mxu1 %v278_v4  ;;  %326 = vmatpush.msrb.mxu3 %v279_v5 }
  0x34   :  { %204 = vmatpush.msra.mxu2 %v157_v31  ;;  %259 = vmatpush.msra.mxu0 %v236_v55 }
  0x35   :  { %307 = vmatpush.msra.mxu1 %v276_v6  ;;  %327 = vmatpush.msrb.mxu3 %v277_v7 }
  0x36   :  { %260 = vmatpush.msra.mxu0 %v235_v56 }
  0x37   :  { %308 = vmatpush.msra.mxu1 %v274_v8  ;;  %328 = vmatpush.msrb.mxu3 %v275_v9 }
  0x38   :  { %261 = vmatpush.msra.mxu0 %v234_v57 }
  0x39   :  { %309 = vmatpush.msra.mxu1 %v272_v16  ;;  %329 = vmatpush.msrb.mxu3 %v273_v17 }
  0x3a   :  { %262 = vmatpush.msra.mxu0 %v233_v58 }
  0x3b   :  { %310 = vmatpush.msra.mxu1 %v270_v18  ;;  %330 = vmatpush.msrb.mxu3 %v271_v19 }
  0x3c   :  { %263 = vmatpush.msra.mxu0 %v232_v59 }
  0x3e   :  { %264 = vmatpush.msra.mxu0 %v231_v60 }
  0x40   :  { %265 = vmatpush.msra.mxu0 %v230_v61 }
  0x9c   :  { %v132_v48 = vpop.f32.mrf.mxu1 }
  0x9d   :  { %v133_v49 = vadd.f32 %v132_v48, %v107_v46 }
  0x9f   :  { %v155_v50 = vmax.f32 %v133_v49, 0.0 }
  0xa1   :  { %205 = vmatmul.f32.vlgmr.msra.gmra.mxu2 %v155_v50 }
  0xa8   :  { %v152_v52 = vpop.f32.mrf.mxu1 }
  0xa9   :  { %v153_v53 = vadd.f32 %v152_v52, %v108_v51 }
  0xab   :  { %v156_v54 = vmax.f32 %v153_v53, 0.0 }
  0xad   :  { %359 = vmatmul.msk.f32.vlgmr.msra.gmra.mxu3 %vm185_vm1, %v156_v54 }
 0x124   :  { %v206_v11 = vpop.f32.mrf.mxu2 }
 0x125   :  { %v207_v12 = vadd.f32 %v369_v10, %v206_v11 }
 0x130   :  { %v226_v13 = vpop.f32.mrf.mxu3 }
 0x131   :  { %v227_v14 = vadd.f32 %v226_v13, %v207_v12 }
 0x133   :  { %v229_v15 = vmax.f32 %v227_v14, 0.0 }
 0x135   :  { %266 = vmatmul.f32.vlgmr.msra.gmra.mxu0 %v229_v15 }
 0x1b2   :  { %v267_v21 = vpop.f32.mrf.mxu0 }
 0x1b3   :  { %v268_v22 = vadd.f32 %v370_v20, %v267_v21 }
 0x1b5   :  { %360 = vmatmul.msk.f32.vlgmr.msra.gmra.mxu1 %vm185_vm1, %v268_v22  ;;  %361 = vmatmul.msk.f32.vlgmr.msrb.gmra.mxu3 %vm185_vm1, %v268_v22 }
 0x232   :  { %v312_v25 = vpop.f32.mrf.mxu1 }
 0x233   :  { %v313_v26 = vadd.f32 %v312_v25, %v288_v24 }
 0x235   :  { %335 = vst [vmem:[#allocation10] sm:$0xff] %v313_v26 }
 0x238   :  { %v332_v28 = vpop.f32.mrf.mxu3 }
 0x239   :  { %v333_v29 = vadd.f32 %v332_v28, %v289_v27 }
 0x23b   :  { %337 = vst.msk [vmem:[#allocation10 + $0x8] sm:$0xff] %vm336_vm2, %v333_v29 }
 0x23c   :  { %348 = dma.vmem_to_hbm [thread:$0]  %s344_s14, 256, %s346_s6, [#allocation4]  }
 0x23d   :  { %497 = dma.done.wait [#allocation4], 256  }
 0x23e   :  { %498 = vsyncadd [#allocation4], 4294967040 }
 0x23f   :  { %353 = vsyncpa [#allocation3], 1 }
 0x240   :  { %354 = vsyncpa [#allocation6], 1 }
 0x241   :  { %355 = vsyncpa [#allocation9], 1 }
 0x242   :  { %356 = vsyncpa [#allocation4], 1 }

</bundles_post_ra>
